<compile_context>
chip_gen: v7x
topology: tpu7x:2x2x1
jax: 0.10.0
libtpu: 0.0.40
codegen_flags: <defaults>
</compile_context>

<pallas_src>
import functools

import jax
import jax.numpy as jnp
from jax.experimental import pallas as pl
from jax.experimental.pallas import tpu as pltpu


def _round_up(x: int, m: int) -> int:
    return (x + m - 1) // m * m


def _cdiv(a: int, b: int) -> int:
    return -(-a // b)


def _tpu_config():
    """Generation-aware defaults keyed off physical VMEM size."""
    vmem_bytes = None
    try:
        info = pltpu.get_tpu_info()
        for name in ("vmem_capacity_bytes", "vmem_size_bytes", "vmem_bytes"):
            vmem_bytes = getattr(info, name, None)
            if vmem_bytes is not None:
                break
    except Exception:
        vmem_bytes = None
    if vmem_bytes is None or vmem_bytes <= 96 * 1024 * 1024:
        # v7x-class (64 MiB physical VMEM) or unknown: conservative budget.
        return dict(block_rows=256, block_k=1024,
                    vmem_limit_bytes=48 * 1024 * 1024)
    # v5e / v6e: 128 MiB physical VMEM -> bigger tiles, fewer grid steps.
    return dict(block_rows=512, block_k=2048,
                vmem_limit_bytes=100 * 1024 * 1024)


def _diffpool_kernel(adj_ref, xw_ref, out_ref, acc_ref, *, n_clusters):
    """Grid step (i, k) of: softmax(l2norm_rows(adj @ XW), axis=-1).

    adj_ref : (TM, TK)      column chunk k of row stripe i (streaming dtype)
    xw_ref  : (TK, C_pad)   matching chunk of the precomputed feats @ W
    out_ref : (TM, C_pad)   resident across the K axis, written on the last k
    acc_ref : (TM, C_pad)   f32 VMEM accumulator
    """
    k = pl.program_id(1)

    @pl.when(k == 0)
    def _():
        acc_ref[...] = jnp.zeros_like(acc_ref)

    acc_ref[...] += jnp.dot(adj_ref[...], xw_ref[...],
                            preferred_element_type=jnp.float32)

    @pl.when(k == pl.num_programs(1) - 1)
    def _():
        y = acc_ref[...]                                   # (TM, C_pad) f32
        lane = jax.lax.broadcasted_iota(jnp.int32, y.shape, 1)
        valid = lane < n_clusters                          # padded W cols are exact 0

        # F.normalize(y, p=2, dim=1): y / max(||y||_2, 1e-12).
        # rsqrt(max(sumsq, eps^2)) == 1 / max(sqrt(sumsq), eps); rsqrt -> EUP.
        sumsq = jnp.sum(y * y, axis=-1, keepdims=True)
        y = y * jax.lax.rsqrt(jnp.maximum(sumsq, 1e-24))

        # Numerically-stable softmax over the real cluster lanes (exact recip so
        # rows sum to 1 to f32 precision; free while the kernel is HBM-bound).
        m = jnp.max(jnp.where(valid, y, -jnp.inf), axis=-1, keepdims=True)
        e = jnp.where(valid, jnp.exp(y - m), 0.0)
        denom = jnp.sum(e, axis=-1, keepdims=True)
        out_ref[...] = (e * pl.reciprocal(denom)).astype(out_ref.dtype)


def diff_pooling_block(feats, adj, weight, *, mxu_dtype=jnp.bfloat16,
                       block_rows=None, block_k=None, vmem_limit_bytes=None):
    """feats: (N, in_dim), adj: (N, N), weight: (in_dim, n_clusters) -> (N, n_clusters) f32."""
    n, in_dim = feats.shape
    n_clusters = weight.shape[1]
    assert adj.shape == (n, n)
    assert weight.shape[0] == in_dim

    cfg = _tpu_config()
    tm_def = block_rows or cfg["block_rows"]
    tk_def = block_k or cfg["block_k"]
    vmem_limit = vmem_limit_bytes or cfg["vmem_limit_bytes"]

    # Lane-dense cluster axis (multiple of 128) for unmasked vst stores.
    c_pad = _round_up(max(n_clusters, 1), 128)

    # Row tile: shrink for small N so the "parallel" row axis has >= 2 steps
    # (feeds both TensorCores on v7x); otherwise use the generation default.
    tm = tm_def
    if n < 2 * tm:
        tm = max(8, _round_up(_cdiv(n, 2), 8))
    n_rows_pad = _round_up(n, tm)

    # K tile over adj columns: evenly-sized 128-aligned chunks.
    num_k = max(1, _cdiv(n, tk_def))
    tk = _round_up(_cdiv(n, num_k), 128)
    n_cols_pad = _round_up(n, tk)

    # XW = feats @ W hoisted out of the kernel (tiny vs. the N^2 adj matmul),
    # zero-padded lane-dense and pre-cast to the MXU streaming dtype.
    xw = jnp.dot(feats, weight, preferred_element_type=jnp.float32)
    xw = jnp.pad(xw, ((0, n_cols_pad - n), (0, c_pad - n_clusters))).astype(mxu_dtype)

    # adj: single fused cast(+pad) wrapper pass, then streamed as-is by the kernel.
    # If the adjacency is already stored in `mxu_dtype` and tile-aligned, this is a no-op.
    adj_s = adj.astype(mxu_dtype)
    if n_rows_pad != n or n_cols_pad != n:
        adj_s = jnp.pad(adj_s, ((0, n_rows_pad - n), (0, n_cols_pad - n)))

    kernel = functools.partial(_diffpool_kernel, n_clusters=n_clusters)

    out = pl.pallas_call(
        kernel,
        out_shape=jax.ShapeDtypeStruct((n_rows_pad, c_pad), jnp.float32),
        grid_spec=pltpu.PrefetchScalarGridSpec(
            num_scalar_prefetch=0,
            grid=(n_rows_pad // tm, n_cols_pad // tk),
            in_specs=[
                pl.BlockSpec((tm, tk), lambda i, k: (i, k)),     # adj chunk
                pl.BlockSpec((tk, c_pad), lambda i, k: (k, 0)),  # XW chunk
            ],
            out_specs=pl.BlockSpec((tm, c_pad), lambda i, k: (i, 0)),
            scratch_shapes=[pltpu.VMEM((tm, c_pad), jnp.float32)],
        ),
        compiler_params=pltpu.CompilerParams(
            dimension_semantics=("parallel", "arbitrary"),  # rows megacore-shard, K reduces
            vmem_limit_bytes=vmem_limit,
        ),
    )(adj_s, xw)

    return out[:n, :n_clusters]


def _reference(feats, adj, weight):
    y = (adj @ feats) @ weight
    norm = jnp.sqrt(jnp.sum(y * y, axis=1, keepdims=True))
    y = y / jnp.maximum(norm, 1e-12)
    return jax.nn.softmax(y, axis=-1)


if __name__ == "__main__":
    # Small shapes consistent with the module: N nodes, in_dim features, n_clusters.
    N, IN_DIM, N_CLUSTERS = 16, 32, 8

    key = jax.random.PRNGKey(0)
    k_feats, k_adj, k_w = jax.random.split(key, 3)

    feats = jax.random.normal(k_feats, (N, IN_DIM), dtype=jnp.float32)
    a = jax.random.uniform(k_adj, (N, N), dtype=jnp.float32)
    adj = 0.5 * (a + a.T)                      # symmetric non-negative adjacency
    weight = jax.random.uniform(k_w, (IN_DIM, N_CLUSTERS), dtype=jnp.float32)  # torch.rand

    ref = _reference(feats, adj, weight)

    # f32 streaming path: tight check against the reference.
    out_f32 = jax.block_until_ready(
        diff_pooling_block(feats, adj, weight, mxu_dtype=jnp.float32)
    )
    assert out_f32.shape == (N, N_CLUSTERS)
    assert jnp.allclose(out_f32, ref, atol=2e-3, rtol=2e-3)
    assert jnp.allclose(jnp.sum(out_f32, axis=-1), 1.0, atol=1e-3)

    # bf16 streaming path (default, perf path): looser check (adj/XW quantized).
    out_bf16 = jax.block_until_ready(diff_pooling_block(feats, adj, weight))
    assert out_bf16.shape == (N, N_CLUSTERS)
    assert jnp.allclose(out_bf16, ref, atol=3e-2, rtol=3e-2)

    print("KERNEL_OK")
</pallas_src>

<mosaic_0001>
module attributes {stable_mosaic.version = 11 : i64} {
  func.func @_diffpool_kernel(%arg0: i32, %arg1: i32, %arg2: memref<8x128xf32, #tpu.memory_space<vmem>>, %arg3: memref<128x128xf32, #tpu.memory_space<vmem>>, %arg4: memref<8x128xf32, #tpu.memory_space<vmem>>, %arg5: memref<8x128xf32, #tpu.memory_space<vmem>>) attributes {dimension_semantics = [#tpu.dimension_semantics<parallel>, #tpu.dimension_semantics<arbitrary>], iteration_bounds = array<i64: 2, 1>, scalar_prefetch = 0 : i64, scratch_operands = 1 : i64, tpu.core_type = #tpu.core_type<tc>, window_params = [{transform_indices = @transform_0, window_bounds = array<i64: 8, 128>}, {transform_indices = @transform_1, window_bounds = array<i64: 128, 128>}, {transform_indices = @transform_2, window_bounds = array<i64: 8, 128>}]} {
    %c0_i32 = arith.constant 0 : i32
    %0 = arith.cmpi eq, %arg1, %c0_i32 : i32
    %1 = arith.extui %0 : i1 to i32
    %c0_i32_0 = arith.constant 0 : i32
    %2 = arith.cmpi ne, %1, %c0_i32_0 : i32
    scf.if %2 {
      %cst_10 = arith.constant 0.000000e+00 : f32
      %12 = vector.broadcast %cst_10 : f32 to vector<8x128xf32>
      %c0_11 = arith.constant 0 : index
      %c0_12 = arith.constant 0 : index
      %13 = vector.load %arg5[%c0_11, %c0_12] : memref<8x128xf32, #tpu.memory_space<vmem>>, vector<8x128xf32>
      tpu.vector_store %arg5[%c0_11, %c0_12], %12 {strides = array<i32>} : memref<8x128xf32, #tpu.memory_space<vmem>>, vector<8x128xf32>,
    } else {
    }
    %c0 = arith.constant 0 : index
    %c0_1 = arith.constant 0 : index
    %3 = vector.load %arg5[%c0, %c0_1] : memref<8x128xf32, #tpu.memory_space<vmem>>, vector<8x128xf32>
    %c0_2 = arith.constant 0 : index
    %c0_3 = arith.constant 0 : index
    %4 = vector.load %arg2[%c0_2, %c0_3] : memref<8x128xf32, #tpu.memory_space<vmem>>, vector<8x128xf32>
    %c0_4 = arith.constant 0 : index
    %c0_5 = arith.constant 0 : index
    %5 = vector.load %arg3[%c0_4, %c0_5] : memref<128x128xf32, #tpu.memory_space<vmem>>, vector<128x128xf32>
    %cst = arith.constant dense<0.000000e+00> : vector<8x128xf32>
    %6 = tpu.matmul %4, %5, %cst {dimension_numbers = #tpu.dot_dimension_numbers<[1], [0], [0], [1], [0, 0, 1, 1], [], []>} : vector<8x128xf32>, vector<128x128xf32>, vector<8x128xf32> -> vector<8x128xf32>
    %7 = arith.addf %3, %6 : vector<8x128xf32>
    %c0_6 = arith.constant 0 : index
    %c0_7 = arith.constant 0 : index
    %8 = vector.load %arg5[%c0_6, %c0_7] : memref<8x128xf32, #tpu.memory_space<vmem>>, vector<8x128xf32>
    tpu.vector_store %arg5[%c0_6, %c0_7], %7 {strides = array<i32>} : memref<8x128xf32, #tpu.memory_space<vmem>>, vector<8x128xf32>,
    %c0_i32_8 = arith.constant 0 : i32
    %9 = arith.cmpi eq, %arg1, %c0_i32_8 : i32
    %10 = arith.extui %9 : i1 to i32
    %c0_i32_9 = arith.constant 0 : i32
    %11 = arith.cmpi ne, %10, %c0_i32_9 : i32
    scf.if %11 {
      %c0_10 = arith.constant 0 : index
      %c0_11 = arith.constant 0 : index
      %12 = vector.load %arg5[%c0_10, %c0_11] : memref<8x128xf32, #tpu.memory_space<vmem>>, vector<8x128xf32>
      %13 = tpu.iota {dimensions = array<i32: 1>} : vector<8x128xi32>
      %c8_i32 = arith.constant 8 : i32
      %14 = vector.broadcast %c8_i32 : i32 to vector<8x128xi32>
      %15 = arith.cmpi slt, %13, %14 : vector<8x128xi32>
      %16 = arith.mulf %12, %12 : vector<8x128xf32>
      %cst_12 = arith.constant dense<0.000000e+00> : vector<8xf32>
      %17 = vector.multi_reduction <add>, %16, %cst_12 [1] : vector<8x128xf32> to vector<8xf32>
      %18 = vector.shape_cast %17 : vector<8xf32> to vector<8x1xf32>
      %cst_13 = arith.constant 1.000000e-24 : f32
      %19 = vector.broadcast %cst_13 : f32 to vector<8x1xf32>
      %20 = arith.maximumf %18, %19 : vector<8x1xf32>
      %21 = math.rsqrt %20 : vector<8x1xf32>
      %22 = vector.broadcast %21 : vector<8x1xf32> to vector<8x128xf32>
      %23 = arith.mulf %12, %22 : vector<8x128xf32>
      %cst_14 = arith.constant 0xFF800000 : f32
      %24 = vector.broadcast %cst_14 : f32 to vector<8x128xf32>
      %25 = arith.select %15, %23, %24 : vector<8x128xi1>, vector<8x128xf32>
      %cst_15 = arith.constant dense<0xFF800000> : vector<8xf32>
      %26 = vector.multi_reduction <maximumf>, %25, %cst_15 [1] : vector<8x128xf32> to vector<8xf32>
      %27 = vector.shape_cast %26 : vector<8xf32> to vector<8x1xf32>
      %28 = vector.broadcast %27 : vector<8x1xf32> to vector<8x128xf32>
      %29 = arith.subf %23, %28 : vector<8x128xf32>
      %30 = math.exp %29 : vector<8x128xf32>
      %cst_16 = arith.constant 0.000000e+00 : f32
      %31 = vector.broadcast %cst_16 : f32 to vector<8x128xf32>
      %32 = arith.select %15, %30, %31 : vector<8x128xi1>, vector<8x128xf32>
      %cst_17 = arith.constant dense<0.000000e+00> : vector<8xf32>
      %33 = vector.multi_reduction <add>, %32, %cst_17 [1] : vector<8x128xf32> to vector<8xf32>
      %34 = vector.shape_cast %33 : vector<8xf32> to vector<8x1xf32>
      %35 = tpu.reciprocal %34 : vector<8x1xf32> -> vector<8x1xf32>
      %36 = vector.broadcast %35 : vector<8x1xf32> to vector<8x128xf32>
      %37 = arith.mulf %32, %36 : vector<8x128xf32>
      %c0_18 = arith.constant 0 : index
      %c0_19 = arith.constant 0 : index
      %38 = vector.load %arg4[%c0_18, %c0_19] : memref<8x128xf32, #tpu.memory_space<vmem>>, vector<8x128xf32>
      tpu.vector_store %arg4[%c0_18, %c0_19], %37 {strides = array<i32>} : memref<8x128xf32, #tpu.memory_space<vmem>>, vector<8x128xf32>,
    } else {
    }
    return
  }
  func.func @transform_0(%arg0: i32, %arg1: i32) -> (i32, i32) {
    %c0_i32 = arith.constant 0 : i32
    return %arg0, %arg1 : i32, i32
  }
  func.func @transform_1(%arg0: i32, %arg1: i32) -> (i32, i32) {
    %c0_i32 = arith.constant 0 : i32
    %c0_i32_0 = arith.constant 0 : i32
    return %arg1, %c0_i32 : i32, i32
  }
  func.func @transform_2(%arg0: i32, %arg1: i32) -> (i32, i32) {
    %c0_i32 = arith.constant 0 : i32
    %c0_i32_0 = arith.constant 0 : i32
    return %arg0, %c0_i32 : i32, i32
  }
}

</mosaic_0001>

<bundles_post_ra>
// kernel: tpu_custom_call.1
= control target key start
LH: loop header
LB: loop body
LE: loop exit
PB: predicated region body
PF: predicated region fallthrough
CT: control target
= control target key end

     0   :  { %7 = vsyncpa [#allocation4], 0  ;;  %s988_s0 = inlined_call_operand.hbm [shape: f32[16,128], index: 0, kind: input, shape index: {}]   ;;  %s989_s1 = inlined_call_operand.hbm [shape: f32[128,128], index: 1, kind: input, shape index: {}]   ;;  %s990_s2 = inlined_call_operand.hbm [shape: f32[16,128], index: 2, kind: output, shape index: {}]  }
   0x1   :  { %9 = vsyncpa [#allocation4 + $0x1], 0 }
   0x2   :  { %10 = vsyncpa [#allocation7], 0 }
   0x3   :  { %11 = vsyncpa [#allocation5], 0 }
   0x4   :  { %13 = vsyncpa [#allocation5 + $0x1], 0  ;;  %s767_s9 = smov 0   ;;  %s769_s10 = smov 0  }
   0x5   :  { %s771_s11 = smov 0   ;;  %s773_s12 = smov 0  }
   0x6   :  { %s775_s13 = smov 0   ;;  %s777_s14 = smov 0  }
   0x7 LB: > { %s423_s15 = sadd.s32 4294967295, %s742_s14   ;;  %s424_s16 = sadd.s32 4294967294, %s742_s14   ;;  %s742_s14 = sphi %s777_s14, %s19_s14   ;;  %s738_s13 = sphi %s775_s13, %s1014_s13   ;;  %s734_s12 = sphi %s773_s12, %s1013_s12   ;;  %s730_s11 = sphi %s771_s11, %s1012_s11   ;;  %s726_s10 = sphi %s769_s10, %s1011_s10   ;;  %s722_s9 = sphi %s767_s9, %s1010_s9  }
   0x8   : > { %p53_p0 = scmp.ne.s32.totalorder %s726_s10, %s722_s9  ;;  %p801_p1 = scmp.eq.s32.totalorder %s423_s15, 0 }
   0x9   : > { %p805_p2 = scmp.eq.s32.totalorder %s423_s15, 1  ;;  %p109_p3 = scmp.eq.s32.totalorder %s424_s16, 1 }
   0xa   : > { %s995_s17 = scalar_select %p801_p1, 1, 0 }
   0xb   : > { %s996_s18 = scalar_select %p805_p2, 1, 0 }
   0xc   : > { %p811_p4 = por %p801_p1, %p53_p0  ;;  %p425_p5 = scmp.ge.s32.totalorder %s742_s14, 1 }
   0xd   : > { %p816_p6 = por %p109_p3, %p53_p0  ;;  %p116_p7 = scmp.lt.s32.totalorder %s742_s14, 3 }
   0xe   : > { %s997_s19 = scalar_select %p811_p4, 1, 0 }
   0xf   : > { %s998_s20 = scalar_select %p816_p6, 1, 0 }
  0x10   : > { %p821_p8 = pnand %p425_p5, %p116_p7  ;;  %s744_s22 = smov [#allocation6]  }
  0x11   : > { %s131_s23 = sshll.u32 %s744_s22, 4  ;;  %s31_s25 = sadd.s32 1, %s738_s13  ;;  %s132_s23 = int_to_ptr.vmem [resolvable:$true] %s131_s23 }
  0x12   : > { %s999_s21 = scalar_select %p821_p8, 1, 0 }
  0x13   : > { %p522_p9 = pneg %p821_p8  ;;  %s598_s28 = scalar_lea.hbm %s989_s1, 2048 }
  0x14   : > { %p599_p12 = scmp.ne.s32.totalorder %s989_s1, %s598_s28  ;;  %p605_p5 = scmp.lt.u32.totalorder %s598_s28, %s989_s1 }
  0x15   : > { %p830_p11 = pnand %p522_p9, %p801_p1 }
  0x17   : > { %p600_p13 = pneg %p830_p11 }
  0x19   : > { %p601_p0 = pnand %p600_p13, %p599_p12 }
  0x1b   : > { %p602_p3 = pneg %p601_p0 }
  0x1d   : > { %p607_p7 = pnand %p605_p5, %p602_p3 }
  0x1f   : > { %610 = shalt.err (!%p607_p7)
}
  0x20   : > { %s611_s5 = scalar_lea.vmem %s132_s23, 2048  ;;  %p619_p1 = scmp.lt.s32.totalorder %s132_s23, %s132_s23 }
  0x21   : > { %p612_p9 = scmp.ne.s32.totalorder %s132_s23, %s611_s5  ;;  %p620_p4 = scmp.lt.s32.totalorder %s611_s5, %s611_s5 }
  0x23   : > { %p614_p10 = pnand %p612_p9, %p600_p13  ;;  %p621_p8 = por %p620_p4, %p619_p1 }
  0x25   : > { %p615_p6 = pneg %p614_p10 }
  0x27   : > { %p622_p2 = pnand %p621_p8, %p615_p6 }
  0x29   : > { %625 = shalt.err (!%p622_p2)
}
  0x2a   : > { %s745_s6 = smov 128   ;;  %s746_s7 = smov 8  }
  0x2b   : > { %525 = dma.hbm_to_vmem [thread:$0]  (!%p830_p11), %s989_s1, 2048, %s132_s23, [#allocation7], %s745_s6, %s745_s6, %s746_s7  }
  0x2c   : > { %p33_p1 = scmp.ge.s32.totalorder %s31_s25, 2  ;;  %s40_s16 = sadd.s32 1, %s730_s11 }
  0x2d   : > { %p47_p2 = scmp.ne.s32.totalorder %s730_s11, %s726_s10  ;;  %p48_p4 = scmp.eq.s32.totalorder %s742_s14, 0 }
  0x2e   : > { %s1016_s25 = smov (%p33_p1, %s31_s25), 0  ;;  %p1002_p8 = scmp.ne.s32.totalorder %s996_s18, 0 }
  0x2f   : > { %p857_p6 = por %p48_p4, %p47_p2  ;;  %s35_s24 = ssub.s32 %s738_s13, %s1016_s25 }
  0x30   : > { %p863_p10 = por %p1002_p8, %p47_p2  ;;  %p535_p12 = scmp.lt.s32.totalorder %s742_s14, 2 }
  0x31   : > { %p38_p11 = scmp.eq.s32.totalorder %s35_s24, 0  ;;  %s145_s23 = sand.u32 1, %s730_s11  }
  0x32   : > { %s428_s27 = sshll.u32 %s145_s23, 3  ;;  %s429_s29 = sshll.u32 %s738_s13, 7 }
  0x33   : > { %s872_s28 = scalar_select %p38_p11, %s730_s11, %s40_s16  }
  0x34   : > { %s878_s4 = scalar_lea.hbm %s988_s0, %s429_s29  ;;  %s149_s18 = scalar_lea.vmem [#allocation3], %s428_s27 }
  0x35   : > { %s157_s5 = sshll.u32 %s149_s18, 4  ;;  %p884_p13 = pnand %p535_p12, %p857_p6  ;;  %s880_s5 = int_to_ptr.vmem [resolvable:$true] %s157_s5 }
  0x36   : > { %s146_s7 = scalar_lea.sflag [#allocation4], %s145_s23  ;;  %s626_s8 = scalar_lea.hbm %s878_s4, 128 }
  0x37   : > { %p627_p0 = scmp.ne.s32.totalorder %s878_s4, %s626_s8  ;;  %p628_p3 = pneg %p884_p13 }
  0x38   : > { %s631_s24 = scalar_lea.hbm %s988_s0, 256  ;;  %p632_p9 = scmp.lt.u32.totalorder %s878_s4, %s988_s0 }
  0x39   : > { %p629_p5 = pnand %p628_p3, %p627_p0  ;;  %p633_p1 = scmp.lt.u32.totalorder %s631_s24, %s626_s8 }
  0x3a   : > { %p635_p4 = scmp.lt.u32.totalorder %s626_s8, %s878_s4 }
  0x3b   : > { %p630_p7 = pneg %p629_p5  ;;  %p634_p2 = por %p633_p1, %p632_p9 }
  0x3d   : > { %p636_p6 = por %p635_p4, %p634_p2 }
  0x3f   : > { %p637_p8 = pnand %p636_p6, %p630_p7 }
  0x41   : > { %640 = shalt.err (!%p637_p8)
}
  0x42   : > { %s641_s23 = scalar_lea.vmem %s880_s5, 128  ;;  %s747_s29 = smov [#allocation3]  }
  0x43   : > { %p642_p12 = scmp.ne.s32.totalorder %s880_s5, %s641_s23  ;;  %s646_s30 = sshll.u32 %s747_s29, 4  ;;  %s647_s30 = int_to_ptr.vmem [resolvable:$false] %s646_s30 }
  0x44   : > { %s648_s3 = scalar_lea.vmem %s647_s30, 256  ;;  %p649_p5 = scmp.lt.s32.totalorder %s880_s5, %s647_s30 }
  0x45   : > { %p644_p11 = pnand %p642_p12, %p628_p3  ;;  %p650_p9 = scmp.lt.s32.totalorder %s648_s3, %s641_s23 }
  0x47   : > { %p645_p0 = pneg %p644_p11  ;;  %p651_p1 = por %p650_p9, %p649_p5 }
  0x49   : > { %p652_p2 = pnand %p651_p1, %p645_p0 }
  0x4b   : > { %655 = shalt.err (!%p652_p2)
}
  0x4c   : > { %529 = dma.hbm_to_vmem [thread:$0]  (!%p884_p13), %s878_s4, 128, %s880_s5, %s146_s7  }
  0x4d   : > { %p1005_p7 = scmp.ne.s32.totalorder %s999_s21, 0 }
  0x4e   : > { %s916_s18 = sand.u32 (!%p1005_p7), 1, %s726_s10   ;;  %p1006_p3 = scmp.ne.s32.totalorder (!%p1005_p7), %s997_s19, 0 }
  0x4f   : > { %166 = sbr.rel (%p1005_p7) target bundleno = 824 (0x338), region = 28  ;;  %s431_s8 = sshll.u32 (!%p1005_p7), %s916_s18, 3 }
  0x50   : > { %s169_s15 = scalar_lea.sflag (!%p1005_p7), [#allocation4], %s916_s18  ;;  %s922_s16 = scalar_lea.vmem (!%p1005_p7), [#allocation3], %s431_s8 }
  0x56   : > { %709 = dma.done.wait (%p1006_p3), %s169_s15, 128  }
  0x57   : > { %711 = vsyncadd (%p1006_p3), %s169_s15, 4294967168  ;;  %p1007_p13 = scmp.ne.s32.totalorder %s995_s17, 0 }
  0x59   : > { %713 = dma.done.wait (%p1007_p13), [#allocation7], 2048  }
  0x5a   : > { %715 = vsyncadd (%p1007_p13), [#allocation7], 4294965248  ;;  %v748_v0 = vmov 0.0|0.0   ;;  %vm749_vm0 = vmmov 0   ;;  %v750_v1 = vmov 0.0   ;;  %v205_v2 = vld [vmem:[#allocation6] sm:$0xff]  ;;  %v297_v32 = vlaneseq }
  0x5b   : > { %490 = vmatprep.subr.bf16.mxu0 %v748_v0  ;;  %487 = vmatprep.mubr.msk.f32.mxu0 %vm749_vm0, %v750_v1  ;;  %v206_v3 = vld [vmem:[#allocation6 + $0x8] sm:$0xff]  ;;  %v207_v4 = vld [vmem:[#allocation6 + $0x10] sm:$0xff]  ;;  %v208_v6 = vld [vmem:[#allocation6 + $0x18] sm:$0xff]  ;;  %s435_s17 = sshll.u32 %s734_s12, 7  ;;  %s196_s19 = scalar_lea.vmem [#allocation8], %s431_s8 }
  0x5c   : > { %v491_v5 = vpack.c.bf16 %v206_v3, %v205_v2  ;;  %v494_v7 = vpack.c.bf16 %v208_v6, %v207_v4  ;;  %v209_v8 = vld [vmem:[#allocation6 + $0x20] sm:$0xff]  ;;  %v210_v9 = vld [vmem:[#allocation6 + $0x28] sm:$0xff]  ;;  %v211_v11 = vld [vmem:[#allocation6 + $0x30] sm:$0xff]  ;;  %v298_v33 = vand.u32 127, %v297_v32  ;;  %s332_s21 = sshll.u32 %s196_s19, 4  ;;  %s939_s6 = scalar_lea.hbm %s990_s2, %s435_s17  ;;  %s941_s21 = int_to_ptr.vmem [resolvable:$true] %s332_s21 }
  0x5d   : > { %v497_v10 = vpack.c.bf16 %v210_v9, %v209_v8  ;;  %v212_v12 = vld [vmem:[#allocation6 + $0x38] sm:$0xff]  ;;  %v213_v14 = vld [vmem:[#allocation6 + $0x40] sm:$0xff]  ;;  %v214_v15 = vld [vmem:[#allocation6 + $0x48] sm:$0xff]  ;;  %s319_s7 = scalar_lea.sflag [#allocation5], %s916_s18  ;;  %s656_s24 = scalar_lea.vmem %s941_s21, 128 }
  0x5e   : > { %492 = vmatpush3.bf16.msra.mxu0 %v491_v5  ;;  %v500_v13 = vpack.c.bf16 %v212_v12, %v211_v11  ;;  %v503_v16 = vpack.c.bf16 %v214_v15, %v213_v14  ;;  %v215_v17 = vld [vmem:[#allocation6 + $0x50] sm:$0xff]  ;;  %v216_v18 = vld [vmem:[#allocation6 + $0x58] sm:$0xff]  ;;  %v217_v20 = vld [vmem:[#allocation6 + $0x60] sm:$0xff]  ;;  %vm299_vm1 = vcmp.lt.s32.totalorder %v298_v33, 8  ;;  %p657_p4 = scmp.ne.s32.totalorder %s941_s21, %s656_s24  ;;  %s751_s12 = smov [#allocation8]  }
  0x5f   : > { %493 = vmatprep.subr.bf16.mxu0 %v748_v0  ;;  %v506_v19 = vpack.c.bf16 %v216_v18, %v215_v17  ;;  %v218_v21 = vld [vmem:[#allocation6 + $0x68] sm:$0xff]  ;;  %v219_v23 = vld [vmem:[#allocation6 + $0x70] sm:$0xff]  ;;  %v220_v24 = vld [vmem:[#allocation6 + $0x78] sm:$0xff]  ;;  %s660_s22 = sshll.u32 %s751_s12, 4  ;;  %s661_s22 = int_to_ptr.vmem [resolvable:$false] %s660_s22 }
  0x60   : > { %v509_v22 = vpack.c.bf16 %v218_v21, %v217_v20  ;;  %v512_v25 = vpack.c.bf16 %v220_v24, %v219_v23  ;;  %v204_v26 = vld [vmem:[%s922_s16] sm:$0xff]  ;;  %p658_p6 = pnand %p657_p4, %p863_p10  ;;  %s662_s27 = scalar_lea.vmem %s661_s22, 256 }
  0x61   : > { %p663_p12 = scmp.lt.s32.totalorder %s941_s21, %s661_s22  ;;  %p664_p11 = scmp.lt.s32.totalorder %s662_s27, %s656_s24 }
  0x62   : > { %495 = vmatpush3.bf16.msra.mxu0 %v494_v7  ;;  %p659_p8 = pneg %p658_p6 }
  0x63   : > { %496 = vmatprep.subr.bf16.mxu0 %v748_v0  ;;  %p665_p0 = por %p664_p11, %p663_p12 }
  0x65   : > { %p666_p5 = pnand %p665_p0, %p659_p8 }
  0x66   : > { %498 = vmatpush3.bf16.msra.mxu0 %v497_v10 }
  0x67   : > { %499 = vmatprep.subr.bf16.mxu0 %v748_v0 }
  0x6a   : > { %501 = vmatpush3.bf16.msra.mxu0 %v500_v13 }
  0x6b   : > { %502 = vmatprep.subr.bf16.mxu0 %v748_v0 }
  0x6e   : > { %504 = vmatpush3.bf16.msra.mxu0 %v503_v16 }
  0x6f   : > { %505 = vmatprep.subr.bf16.mxu0 %v748_v0 }
  0x72   : > { %507 = vmatpush3.bf16.msra.mxu0 %v506_v19 }
  0x73   : > { %508 = vmatprep.subr.bf16.mxu0 %v748_v0 }
  0x76   : > { %510 = vmatpush3.bf16.msra.mxu0 %v509_v22 }
  0x77   : > { %511 = vmatprep.subr.bf16.mxu0 %v748_v0 }
  0x7a   : > { %513 = vmatpush3.bf16.msra.mxu0 %v512_v25 }
  0x7d   : > { %488 = vmatmul.mubr.f32.vlgmr.msra.gmra.mrb[0].mxu0 %v204_v26 }
 0x150   : > { %v287_v27 = vpop.f32.mrb[0].mxu0 }
 0x151   : > { %v489_v28 = vpop.f32.mrb[1].mxu0  ;;  %v300_v29 = vmul.f32 %v287_v27, %v287_v27 }
 0x153   : > { %301 = vadd.xlane.f32.xlu0 %v300_v29 }
 0x1e0   : > { %v302_v30 = vpop.xlane.xlu0 %301 }
 0x1e1   : > { %v303_v31 = vmax.f32 %v302_v30, 1e-24 }
 0x1e3   : > { %592 = vrsqrt.f32 %v303_v31 }
 0x1ed   : > { %v593_v34 = vpop.eup %592 }
 0x1ee   : > { %v305_v35 = vmul.f32 %v593_v34, %v287_v27 }
 0x1f0   : > { %v306_v36 = vsel %vm299_vm1, %v305_v35, -inf }
 0x1f1   : > { %307 = vmax.xlane.f32.xlu0 %v306_v36 }
 0x27e   : > { %v308_v37 = vpop.xlane.xlu0 %307 }
 0x27f   : > { %v309_v38 = vsub.f32 %v305_v35, %v308_v37 }
 0x281   : > { %v310_v39 = vmul.f32 1.442695, %v309_v38 }
 0x283   : > { %594 = vpow2.f32 %v310_v39 }
 0x28d   : > { %v595_v40 = vpop.eup %594 }
 0x28e   : > { %v312_v41 = vsel %vm299_vm1, %v595_v40, 0.0 }
 0x28f   : > { %313 = vadd.xlane.f32.xlu1 %v312_v41 }
 0x31c   : > { %v314_v42 = vpop.xlane.xlu1 %313 }
 0x31d   : > { %596 = vrcp.f32 %v314_v42 }
 0x327   : > { %v597_v43 = vpop.eup %596 }
 0x328   : > { %v316_v44 = vmul.f32 %v597_v43, %v312_v41 }
 0x32a   : > { %317 = vst [vmem:[%s196_s19] sm:$0xff] %v316_v44 }
 0x32b   : > { %669 = shalt.err (!%p666_p5)
}
 0x32c   : > { %s670_s23 = scalar_lea.hbm %s939_s6, 128  ;;  %s674_s3 = scalar_lea.hbm %s990_s2, 256 }
 0x32d   : > { %p671_p9 = scmp.ne.s32.totalorder %s939_s6, %s670_s23  ;;  %p675_p7 = scmp.lt.u32.totalorder %s939_s6, %s990_s2 }
 0x32e   : > { %p676_p3 = scmp.lt.u32.totalorder %s674_s3, %s670_s23  ;;  %p678_p4 = scmp.lt.u32.totalorder %s670_s23, %s939_s6 }
 0x32f   : > { %p672_p1 = pnand %p671_p9, %p863_p10 }
 0x330   : > { %p677_p13 = por %p676_p3, %p675_p7 }
 0x331   : > { %p673_p2 = pneg %p672_p1 }
 0x332   : > { %p679_p6 = por %p678_p4, %p677_p13 }
 0x334   : > { %p680_p8 = pnand %p679_p6, %p673_p2 }
 0x336   : > { %683 = shalt.err (!%p680_p8)
}
 0x337   : > { %520 = dma.vmem_to_hbm [thread:$0]  (%p863_p10), %s941_s21, 128, %s939_s6, %s319_s7  }
 0x338 PF: > { %s344_s15 = sand.u32 1, %s722_s9   ;;  %p1008_p12 = scmp.ne.s32.totalorder %s998_s20, 0 }
 0x339   : > { %p1009_p11 = scmp.ge.s32.totalorder %s742_s14, 2  ;;  %s345_s16 = scalar_lea.sflag [#allocation5], %s344_s15 }
 0x33b   : > { %p531_p0 = pnand %p1009_p11, %p1008_p12 }
 0x33d   : > { %717 = dma.done.wait (!%p531_p0), %s345_s16, 128  }
 0x33e   : > { %719 = vsyncadd (!%p531_p0), %s345_s16, 4294967168  ;;  %s19_s14 = sadd.s32 1, %s742_s14   ;;  %s1010_s9 = smov %s726_s10 }
 0x33f   : > { %p16_p5 = scmp.ge.s32.totalorder %s19_s14, 4   ;;  %s1011_s10 = smov %s730_s11 }
 0x340   : > { %s1012_s11 = smov %s872_s28  ;;  %s1013_s12 = smov %s738_s13 }
 0x341   : > { %s1014_s13 = smov %s1016_s25  ;;  %18 = sbr.rel (!%p16_p5) target bundleno = 7 (0x7), region = 86 }
 0x348   :  { %350 = vsyncpa [#allocation4], 1 }
 0x349   :  { %352 = vsyncpa [#allocation4 + $0x1], 1 }
 0x34a   :  { %353 = vsyncpa [#allocation7], 1 }
 0x34b   :  { %354 = vsyncpa [#allocation5], 1 }
 0x34c   :  { %356 = vsyncpa [#allocation5 + $0x1], 1 }

</bundles_post_ra>
